<compile_context>
chip_gen: v7x
topology: tpu7x:2x2x1
jax: 0.10.0
libtpu: 0.0.40
codegen_flags: <defaults>
</compile_context>

<pallas_src>
import functools

import jax
import jax.numpy as jnp
from jax import lax
from jax.experimental import pallas as pl
from jax.experimental.pallas import tpu as pltpu

DATA_DIM = 16
REP_DIM = 32
HIDDEN = 128

# dot_general dims for y = x @ W.T with torch-layout weights W: (out, in).
_CONTRACT_LAST = (((1,), (1,)), ((), ()))


def _autoencoder_kernel(x_ref,
                        w1_ref, b1_ref,
                        w2_ref, b2_ref,
                        w3_ref, b3_ref,
                        w4_ref, b4_ref,
                        enc_ref, dec_ref):
    """One batch tile of the full MLP chain, batch-major.

    Shapes inside the kernel (tb = batch tile, multiple of 8):
      x    : (tb, 16)
      w1   : (128, 16)   b1 : (1, 128)
      w2   : (32, 128)   b2 : (1, 32)
      w3   : (128, 32)   b3 : (1, 128)
      w4   : (16, 128)   b4 : (1, 16)
      enc  : (tb, 32)    dec : (tb, 16)
    Matmuls hit the MXU; tanh (and the tanh-form sigmoid) go to the EUP.
    """
    x = x_ref[...].astype(jnp.float32)

    # --- encoder ---
    h1 = jnp.tanh(
        lax.dot_general(x, w1_ref[...], _CONTRACT_LAST,
                        preferred_element_type=jnp.float32) + b1_ref[...])
    enc = lax.dot_general(h1, w2_ref[...], _CONTRACT_LAST,
                          preferred_element_type=jnp.float32) + b2_ref[...]

    # --- decoder ---
    h2 = jnp.tanh(
        lax.dot_general(enc, w3_ref[...], _CONTRACT_LAST,
                        preferred_element_type=jnp.float32) + b3_ref[...])
    z = lax.dot_general(h2, w4_ref[...], _CONTRACT_LAST,
                        preferred_element_type=jnp.float32) + b4_ref[...]
    # sigmoid(z) == 0.5 * (tanh(z/2) + 1): one EUP push, mul/add on idle VPU.
    dec = 0.5 * jnp.tanh(0.5 * z) + 0.5

    enc_ref[...] = enc.astype(enc_ref.dtype)
    dec_ref[...] = dec.astype(dec_ref.dtype)


def _round_up(x, m):
    return ((x + m - 1) // m) * m


@functools.partial(jax.jit, static_argnames=("tile_b",))
def autoencoder_forward(x, params, *, tile_b=8192):
    """x: (B, DATA_DIM) f32.  params: torch-layout weights (out, in), biases (1, out).

    Returns (encoded (B, REP_DIM), decoded (B, DATA_DIM)) — same layout as torch.
    """
    B = x.shape[0]

    # Batch rides the sublane axis, so the tile only needs to be a multiple of 8.
    tb = min(_round_up(tile_b, 8), _round_up(B, 8))
    # For large batches keep >= ~8 grid steps so both v7x TensorCores (and the
    # software pipeline) have work.
    if B >= 8 * 512:
        tb = min(tb, max(512, _round_up(pl.cdiv(B, 8), 8)))
    grid = (pl.cdiv(B, tb),)   # boundary block masks the ragged tail

    def const_spec(shape):
        # Constant index_map -> DMA'd once, VMEM-resident across all grid steps.
        return pl.BlockSpec(shape, lambda i: (0, 0))

    in_specs = [
        pl.BlockSpec((tb, DATA_DIM), lambda i: (i, 0)),             # x tile
        const_spec((HIDDEN, DATA_DIM)), const_spec((1, HIDDEN)),    # w1, b1
        const_spec((REP_DIM, HIDDEN)),  const_spec((1, REP_DIM)),   # w2, b2
        const_spec((HIDDEN, REP_DIM)),  const_spec((1, HIDDEN)),    # w3, b3
        const_spec((DATA_DIM, HIDDEN)), const_spec((1, DATA_DIM)),  # w4, b4
    ]
    out_specs = (
        pl.BlockSpec((tb, REP_DIM), lambda i: (i, 0)),
        pl.BlockSpec((tb, DATA_DIM), lambda i: (i, 0)),
    )
    out_shape = (
        jax.ShapeDtypeStruct((B, REP_DIM), jnp.float32),
        jax.ShapeDtypeStruct((B, DATA_DIM), jnp.float32),
    )

    enc, dec = pl.pallas_call(
        _autoencoder_kernel,
        grid=grid,
        in_specs=in_specs,
        out_specs=out_specs,
        out_shape=out_shape,
        compiler_params=pltpu.CompilerParams(
            # TODO(synk): on v7x try pltpu.CORE_PARALLEL for an explicit
            # two-TensorCore split of the batch axis.
            dimension_semantics=("parallel",),
            # Headroom over v5e's 16 MiB default scoped limit; well under
            # physical VMEM on every generation (v7x: 64 MiB).
            vmem_limit_bytes=48 * 1024 * 1024,
        ),
    )(
        x,
        params["w1"], params["b1"],
        params["w2"], params["b2"],
        params["w3"], params["b3"],
        params["w4"], params["b4"],
    )
    return enc, dec


def init_params(key):
    """Deterministic init mimicking torch.nn.Linear default:
    U(-1/sqrt(fan_in), 1/sqrt(fan_in)); weights (out, in), biases (1, out)."""
    dims = [
        (DATA_DIM, HIDDEN),   # encoder layer 1
        (HIDDEN, REP_DIM),    # encoder layer 2
        (REP_DIM, HIDDEN),    # decoder layer 1
        (HIDDEN, DATA_DIM),   # decoder layer 2
    ]
    params = {}
    keys = jax.random.split(key, 2 * len(dims))
    for i, (fan_in, fan_out) in enumerate(dims):
        bound = 1.0 / (fan_in ** 0.5)
        params[f"w{i + 1}"] = jax.random.uniform(
            keys[2 * i], (fan_out, fan_in), jnp.float32, -bound, bound)
        params[f"b{i + 1}"] = jax.random.uniform(
            keys[2 * i + 1], (1, fan_out), jnp.float32, -bound, bound)
    return params


def reference_forward(x, params):
    """Plain-JAX reference (torch semantics: y = x @ W.T + b)."""
    h1 = jnp.tanh(x @ params["w1"].T + params["b1"])
    enc = h1 @ params["w2"].T + params["b2"]
    h2 = jnp.tanh(enc @ params["w3"].T + params["b3"])
    dec = jax.nn.sigmoid(h2 @ params["w4"].T + params["b4"])
    return enc, dec


if __name__ == "__main__":
    key = jax.random.PRNGKey(0)
    pkey, xkey, xkey2 = jax.random.split(key, 3)
    params = init_params(pkey)

    # Tiny batch: single grid step, tile shrunk to the (8-aligned) batch.
    B = 8
    x = jax.random.normal(xkey, (B, DATA_DIM), jnp.float32)
    enc, dec = autoencoder_forward(x, params)
    jax.block_until_ready((enc, dec))

    enc_ref, dec_ref = reference_forward(x, params)
    assert enc.shape == (B, REP_DIM) and dec.shape == (B, DATA_DIM)
    assert jnp.allclose(enc, enc_ref, atol=1e-5, rtol=1e-5)
    assert jnp.allclose(dec, dec_ref, atol=1e-5, rtol=1e-5)

    # Multi-tile path with a non-divisible batch: exercises the pipelined grid
    # and the masked boundary block (no explicit padding anywhere).
    B2 = 300
    x2 = jax.random.normal(xkey2, (B2, DATA_DIM), jnp.float32)
    enc2, dec2 = autoencoder_forward(x2, params, tile_b=128)
    jax.block_until_ready((enc2, dec2))
    enc2_ref, dec2_ref = reference_forward(x2, params)
    assert enc2.shape == (B2, REP_DIM) and dec2.shape == (B2, DATA_DIM)
    assert jnp.allclose(enc2, enc2_ref, atol=1e-5, rtol=1e-5)
    assert jnp.allclose(dec2, dec2_ref, atol=1e-5, rtol=1e-5)

    print("KERNEL_OK")
</pallas_src>

<mosaic_0001>
module attributes {stable_mosaic.version = 11 : i64} {
  func.func @_autoencoder_kernel(%arg0: i32, %arg1: memref<8x16xf32, #tpu.memory_space<vmem>>, %arg2: memref<128x16xf32, #tpu.memory_space<vmem>>, %arg3: memref<1x128xf32, #tpu.memory_space<vmem>>, %arg4: memref<32x128xf32, #tpu.memory_space<vmem>>, %arg5: memref<1x32xf32, #tpu.memory_space<vmem>>, %arg6: memref<128x32xf32, #tpu.memory_space<vmem>>, %arg7: memref<1x128xf32, #tpu.memory_space<vmem>>, %arg8: memref<16x128xf32, #tpu.memory_space<vmem>>, %arg9: memref<1x16xf32, #tpu.memory_space<vmem>>, %arg10: memref<8x32xf32, #tpu.memory_space<vmem>>, %arg11: memref<8x16xf32, #tpu.memory_space<vmem>>) attributes {dimension_semantics = [#tpu.dimension_semantics<parallel>], iteration_bounds = array<i64: 1>, scalar_prefetch = 0 : i64, scratch_operands = 0 : i64, tpu.core_type = #tpu.core_type<tc>, window_params = [{transform_indices = @transform_0, window_bounds = array<i64: 8, 16>}, {pipeline_mode = #tpu.pipeline_mode<synchronous>, transform_indices = @transform_1, window_bounds = array<i64: 128, 16>}, {pipeline_mode = #tpu.pipeline_mode<synchronous>, transform_indices = @transform_2, window_bounds = array<i64: 1, 128>}, {pipeline_mode = #tpu.pipeline_mode<synchronous>, transform_indices = @transform_3, window_bounds = array<i64: 32, 128>}, {pipeline_mode = #tpu.pipeline_mode<synchronous>, transform_indices = @transform_4, window_bounds = array<i64: 1, 32>}, {pipeline_mode = #tpu.pipeline_mode<synchronous>, transform_indices = @transform_5, window_bounds = array<i64: 128, 32>}, {pipeline_mode = #tpu.pipeline_mode<synchronous>, transform_indices = @transform_6, window_bounds = array<i64: 1, 128>}, {pipeline_mode = #tpu.pipeline_mode<synchronous>, transform_indices = @transform_7, window_bounds = array<i64: 16, 128>}, {pipeline_mode = #tpu.pipeline_mode<synchronous>, transform_indices = @transform_8, window_bounds = array<i64: 1, 16>}, {transform_indices = @transform_9, window_bounds = array<i64: 8, 32>}, {transform_indices = @transform_10, window_bounds = array<i64: 8, 16>}]} {
    %c0 = arith.constant 0 : index
    %c0_0 = arith.constant 0 : index
    %0 = vector.load %arg1[%c0, %c0_0] : memref<8x16xf32, #tpu.memory_space<vmem>>, vector<8x16xf32>
    %c0_1 = arith.constant 0 : index
    %c0_2 = arith.constant 0 : index
    %1 = vector.load %arg2[%c0_1, %c0_2] : memref<128x16xf32, #tpu.memory_space<vmem>>, vector<128x16xf32>
    %cst = arith.constant dense<0.000000e+00> : vector<8x128xf32>
    %2 = tpu.matmul %0, %1, %cst {dimension_numbers = #tpu.dot_dimension_numbers<[1], [1], [0], [0], [0, 0, 1, 0], [], []>} : vector<8x16xf32>, vector<128x16xf32>, vector<8x128xf32> -> vector<8x128xf32>
    %c0_3 = arith.constant 0 : index
    %c0_4 = arith.constant 0 : index
    %3 = vector.load %arg3[%c0_3, %c0_4] : memref<1x128xf32, #tpu.memory_space<vmem>>, vector<1x128xf32>
    %4 = vector.broadcast %3 : vector<1x128xf32> to vector<8x128xf32>
    %5 = arith.addf %2, %4 : vector<8x128xf32>
    %6 = math.tanh %5 : vector<8x128xf32>
    %c0_5 = arith.constant 0 : index
    %c0_6 = arith.constant 0 : index
    %7 = vector.load %arg4[%c0_5, %c0_6] : memref<32x128xf32, #tpu.memory_space<vmem>>, vector<32x128xf32>
    %cst_7 = arith.constant dense<0.000000e+00> : vector<8x32xf32>
    %8 = tpu.matmul %6, %7, %cst_7 {dimension_numbers = #tpu.dot_dimension_numbers<[1], [1], [0], [0], [0, 0, 1, 0], [], []>} : vector<8x128xf32>, vector<32x128xf32>, vector<8x32xf32> -> vector<8x32xf32>
    %c0_8 = arith.constant 0 : index
    %c0_9 = arith.constant 0 : index
    %9 = vector.load %arg5[%c0_8, %c0_9] : memref<1x32xf32, #tpu.memory_space<vmem>>, vector<1x32xf32>
    %10 = vector.broadcast %9 : vector<1x32xf32> to vector<8x32xf32>
    %11 = arith.addf %8, %10 : vector<8x32xf32>
    %c0_10 = arith.constant 0 : index
    %c0_11 = arith.constant 0 : index
    %12 = vector.load %arg6[%c0_10, %c0_11] : memref<128x32xf32, #tpu.memory_space<vmem>>, vector<128x32xf32>
    %cst_12 = arith.constant dense<0.000000e+00> : vector<8x128xf32>
    %13 = tpu.matmul %11, %12, %cst_12 {dimension_numbers = #tpu.dot_dimension_numbers<[1], [1], [0], [0], [0, 0, 1, 0], [], []>} : vector<8x32xf32>, vector<128x32xf32>, vector<8x128xf32> -> vector<8x128xf32>
    %c0_13 = arith.constant 0 : index
    %c0_14 = arith.constant 0 : index
    %14 = vector.load %arg7[%c0_13, %c0_14] : memref<1x128xf32, #tpu.memory_space<vmem>>, vector<1x128xf32>
    %15 = vector.broadcast %14 : vector<1x128xf32> to vector<8x128xf32>
    %16 = arith.addf %13, %15 : vector<8x128xf32>
    %17 = math.tanh %16 : vector<8x128xf32>
    %c0_15 = arith.constant 0 : index
    %c0_16 = arith.constant 0 : index
    %18 = vector.load %arg8[%c0_15, %c0_16] : memref<16x128xf32, #tpu.memory_space<vmem>>, vector<16x128xf32>
    %cst_17 = arith.constant dense<0.000000e+00> : vector<8x16xf32>
    %19 = tpu.matmul %17, %18, %cst_17 {dimension_numbers = #tpu.dot_dimension_numbers<[1], [1], [0], [0], [0, 0, 1, 0], [], []>} : vector<8x128xf32>, vector<16x128xf32>, vector<8x16xf32> -> vector<8x16xf32>
    %c0_18 = arith.constant 0 : index
    %c0_19 = arith.constant 0 : index
    %20 = vector.load %arg9[%c0_18, %c0_19] : memref<1x16xf32, #tpu.memory_space<vmem>>, vector<1x16xf32>
    %21 = vector.broadcast %20 : vector<1x16xf32> to vector<8x16xf32>
    %22 = arith.addf %19, %21 : vector<8x16xf32>
    %cst_20 = arith.constant 5.000000e-01 : f32
    %23 = vector.broadcast %cst_20 : f32 to vector<8x16xf32>
    %24 = arith.mulf %23, %22 : vector<8x16xf32>
    %25 = math.tanh %24 : vector<8x16xf32>
    %cst_21 = arith.constant 5.000000e-01 : f32
    %26 = vector.broadcast %cst_21 : f32 to vector<8x16xf32>
    %27 = arith.mulf %26, %25 : vector<8x16xf32>
    %cst_22 = arith.constant 5.000000e-01 : f32
    %28 = vector.broadcast %cst_22 : f32 to vector<8x16xf32>
    %29 = arith.addf %27, %28 : vector<8x16xf32>
    %c0_23 = arith.constant 0 : index
    %c0_24 = arith.constant 0 : index
    %30 = vector.load %arg10[%c0_23, %c0_24] : memref<8x32xf32, #tpu.memory_space<vmem>>, vector<8x32xf32>
    tpu.vector_store %arg10[%c0_23, %c0_24], %11 {strides = array<i32>} : memref<8x32xf32, #tpu.memory_space<vmem>>, vector<8x32xf32>,
    %c0_25 = arith.constant 0 : index
    %c0_26 = arith.constant 0 : index
    %31 = vector.load %arg11[%c0_25, %c0_26] : memref<8x16xf32, #tpu.memory_space<vmem>>, vector<8x16xf32>
    tpu.vector_store %arg11[%c0_25, %c0_26], %29 {strides = array<i32>} : memref<8x16xf32, #tpu.memory_space<vmem>>, vector<8x16xf32>,
    return
  }
  func.func @transform_0(%arg0: i32) -> (i32, i32) {
    %c0_i32 = arith.constant 0 : i32
    %c0_i32_0 = arith.constant 0 : i32
    return %arg0, %c0_i32 : i32, i32
  }
  func.func @transform_1(%arg0: i32) -> (i32, i32) {
    %c0_i32 = arith.constant 0 : i32
    %c0_i32_0 = arith.constant 0 : i32
    %c0_i32_1 = arith.constant 0 : i32
    return %c0_i32, %c0_i32_0 : i32, i32
  }
  func.func @transform_2(%arg0: i32) -> (i32, i32) {
    %c0_i32 = arith.constant 0 : i32
    %c0_i32_0 = arith.constant 0 : i32
    %c0_i32_1 = arith.constant 0 : i32
    return %c0_i32, %c0_i32_0 : i32, i32
  }
  func.func @transform_3(%arg0: i32) -> (i32, i32) {
    %c0_i32 = arith.constant 0 : i32
    %c0_i32_0 = arith.constant 0 : i32
    %c0_i32_1 = arith.constant 0 : i32
    return %c0_i32, %c0_i32_0 : i32, i32
  }
  func.func @transform_4(%arg0: i32) -> (i32, i32) {
    %c0_i32 = arith.constant 0 : i32
    %c0_i32_0 = arith.constant 0 : i32
    %c0_i32_1 = arith.constant 0 : i32
    return %c0_i32, %c0_i32_0 : i32, i32
  }
  func.func @transform_5(%arg0: i32) -> (i32, i32) {
    %c0_i32 = arith.constant 0 : i32
    %c0_i32_0 = arith.constant 0 : i32
    %c0_i32_1 = arith.constant 0 : i32
    return %c0_i32, %c0_i32_0 : i32, i32
  }
  func.func @transform_6(%arg0: i32) -> (i32, i32) {
    %c0_i32 = arith.constant 0 : i32
    %c0_i32_0 = arith.constant 0 : i32
    %c0_i32_1 = arith.constant 0 : i32
    return %c0_i32, %c0_i32_0 : i32, i32
  }
  func.func @transform_7(%arg0: i32) -> (i32, i32) {
    %c0_i32 = arith.constant 0 : i32
    %c0_i32_0 = arith.constant 0 : i32
    %c0_i32_1 = arith.constant 0 : i32
    return %c0_i32, %c0_i32_0 : i32, i32
  }
  func.func @transform_8(%arg0: i32) -> (i32, i32) {
    %c0_i32 = arith.constant 0 : i32
    %c0_i32_0 = arith.constant 0 : i32
    %c0_i32_1 = arith.constant 0 : i32
    return %c0_i32, %c0_i32_0 : i32, i32
  }
  func.func @transform_9(%arg0: i32) -> (i32, i32) {
    %c0_i32 = arith.constant 0 : i32
    %c0_i32_0 = arith.constant 0 : i32
    return %arg0, %c0_i32 : i32, i32
  }
  func.func @transform_10(%arg0: i32) -> (i32, i32) {
    %c0_i32 = arith.constant 0 : i32
    %c0_i32_0 = arith.constant 0 : i32
    return %arg0, %c0_i32 : i32, i32
  }
}

</mosaic_0001>

<bundles_post_ra>
// kernel: autoencoder_forward.1
= control target key start
LH: loop header
LB: loop body
LE: loop exit
PB: predicated region body
PF: predicated region fallthrough
CT: control target
= control target key end

     0   :  { %16 = vsyncpa [#allocation3], 0  ;;  %vm60_vm0 = vcmask 130048   ;;  %v823_v2 = vmov 0.0|0.0   ;;  %vm824_vm2 = vmmov 0   ;;  %v825_v5 = vmov 0.0   ;;  %s1111_s0 = inlined_call_operand.vmem [shape: f32[8,16], index: 0, kind: input, shape index: {}]   ;;  %s1112_s1 = inlined_call_operand.vmem [shape: f32[128,16], index: 1, kind: input, shape index: {}]   ;;  %s1113_s2 = inlined_call_operand.vmem [shape: f32[1,128], index: 2, kind: input, shape index: {}]   ;;  %s1114_s3 = inlined_call_operand.vmem [shape: f32[32,128], index: 3, kind: input, shape index: {}]   ;;  %s1115_s4 = inlined_call_operand.vmem [shape: f32[1,32], index: 4, kind: input, shape index: {}]   ;;  %s1116_s5 = inlined_call_operand.vmem [shape: f32[128,32], index: 5, kind: input, shape index: {}]   ;;  %s1117_s6 = inlined_call_operand.vmem [shape: f32[1,128], index: 6, kind: input, shape index: {}]   ;;  %s1118_s7 = inlined_call_operand.vmem [shape: f32[16,128], index: 7, kind: input, shape index: {}]   ;;  %s1119_s8 = inlined_call_operand.vmem [shape: f32[1,16], index: 8, kind: input, shape index: {}]   ;;  %s1120_s9 = inlined_call_operand.hbm [shape: f32[8,32], index: 9, kind: output, shape index: {0}]   ;;  %s1121_s10 = inlined_call_operand.hbm [shape: f32[8,16], index: 10, kind: output, shape index: {1}]  }
   0x1   :  { %v37_v0 = vld [vmem:[%s1112_s1] sm:$0xff]  ;;  %v38_v1 = vld [vmem:[%s1112_s1 + $0x8] sm:$0xff]  ;;  %691 = vmatprep.subr.bf16.mxu0 %v823_v2  ;;  %vm892_vm1 = vmpackc.low %vm60_vm0, %vm60_vm0  ;;  %723 = vmatprep.subr.bf16.mxu1 %v823_v2 }
   0x2   :  { %v692_v3 = vpack.c.bf16 %v38_v1, %v37_v0  ;;  %635 = vmatprep.mubr.msk.f32.mxu0 %vm824_vm2, %v825_v5  ;;  %646 = vmatprep.mubr.msk.f32.mxu1 %vm824_vm2, %v825_v5  ;;  %v39_v6 = vld [vmem:[%s1112_s1 + $0x10] sm:$0xff]  ;;  %v40_v7 = vld [vmem:[%s1112_s1 + $0x18] sm:$0xff]  ;;  %v183_v8 = vld [vmem:[%s1114_s3] sm:$0xff] }
   0x3   :  { %v184_v9 = vld [vmem:[%s1114_s3 + $0x8] sm:$0xff]  ;;  %v696_v10 = vpack.c.bf16 %v40_v7, %v39_v6 }
   0x4   :  { %694 = vmatpush3.bf16.xpose.msk.msra.mxu0 %vm892_vm1, %v692_v3  ;;  %v724_v11 = vpack.c.bf16 %v184_v9, %v183_v8 }
   0x5   :  { %695 = vmatprep.subr.bf16.mxu0 %v823_v2 }
   0x6   :  { %17 = vsyncpa [#allocation5], 0  ;;  %725 = vmatpush3.bf16.xpose.msra.mxu1 %v724_v11  ;;  %v41_v12 = vld [vmem:[%s1112_s1 + $0x20] sm:$0xff]  ;;  %v42_v13 = vld [vmem:[%s1112_s1 + $0x28] sm:$0xff]  ;;  %vm287_vm3 = vcmask 261120  }
   0x7   :  { %726 = vmatprep.subr.bf16.mxu1 %v823_v2  ;;  %v700_v14 = vpack.c.bf16 %v42_v13, %v41_v12  ;;  %v43_v15 = vld [vmem:[%s1112_s1 + $0x30] sm:$0xff]  ;;  %v44_v16 = vld [vmem:[%s1112_s1 + $0x38] sm:$0xff]  ;;  %v45_v18 = vld [vmem:[%s1112_s1 + $0x40] sm:$0xff] }
   0x8   :  { %v704_v17 = vpack.c.bf16 %v44_v16, %v43_v15  ;;  %v46_v19 = vld [vmem:[%s1112_s1 + $0x48] sm:$0xff]  ;;  %v47_v21 = vld [vmem:[%s1112_s1 + $0x50] sm:$0xff]  ;;  %v48_v22 = vld [vmem:[%s1112_s1 + $0x58] sm:$0xff] }
   0x9   :  { %v708_v20 = vpack.c.bf16 %v46_v19, %v45_v18  ;;  %v712_v23 = vpack.c.bf16 %v48_v22, %v47_v21  ;;  %v49_v24 = vld [vmem:[%s1112_s1 + $0x60] sm:$0xff]  ;;  %v50_v25 = vld [vmem:[%s1112_s1 + $0x68] sm:$0xff]  ;;  %v51_v27 = vld [vmem:[%s1112_s1 + $0x70] sm:$0xff] }
   0xa   :  { %v716_v26 = vpack.c.bf16 %v50_v25, %v49_v24  ;;  %v52_v28 = vld [vmem:[%s1112_s1 + $0x78] sm:$0xff]  ;;  %v36_v30 = vld [vmem:[%s1111_s0] sm:$0xff]  ;;  %v185_v31 = vld [vmem:[%s1114_s3 + $0x10] sm:$0xff] }
   0xb   :  { %v720_v29 = vpack.c.bf16 %v52_v28, %v51_v27  ;;  %v186_v32 = vld [vmem:[%s1114_s3 + $0x18] sm:$0xff]  ;;  %v523_v34 = vld [vmem:[%s1113_s2] ss:$0 sm:$0xff]  ;;  %v265_v39 = vld [vmem:[%s1116_s5 + $0x8] sm:$0xff] }
   0xc   :  { %698 = vmatpush3.bf16.xpose.msk.msra.mxu0 %vm892_vm1, %v696_v10  ;;  %v727_v33 = vpack.c.bf16 %v186_v32, %v185_v31  ;;  %v264_v38 = vld [vmem:[%s1116_s5] sm:$0xff]  ;;  %vm998_vm4 = vmpackc.low %vm287_vm3, %vm287_vm3  ;;  %v266_v43 = vld [vmem:[%s1116_s5 + $0x10] sm:$0xff] }
   0xd   :  { %699 = vmatprep.subr.bf16.mxu0 %v823_v2  ;;  %v730_v40 = vpack.c.bf16 %v265_v39, %v264_v38  ;;  %v267_v44 = vld [vmem:[%s1116_s5 + $0x18] sm:$0xff]  ;;  %v268_v46 = vld [vmem:[%s1116_s5 + $0x20] sm:$0xff]  ;;  %v269_v47 = vld [vmem:[%s1116_s5 + $0x28] sm:$0xff] }
   0xe   :  { %728 = vmatpush3.bf16.xpose.msra.mxu1 %v727_v33  ;;  %v734_v45 = vpack.c.bf16 %v267_v44, %v266_v43  ;;  %v738_v48 = vpack.c.bf16 %v269_v47, %v268_v46  ;;  %v270_v49 = vld [vmem:[%s1116_s5 + $0x30] sm:$0xff]  ;;  %v271_v50 = vld [vmem:[%s1116_s5 + $0x38] sm:$0xff]  ;;  %v272_v52 = vld [vmem:[%s1116_s5 + $0x40] sm:$0xff] }
   0xf   :  { %729 = vmatprep.subr.bf16.mxu1 %v823_v2  ;;  %v742_v51 = vpack.c.bf16 %v271_v50, %v270_v49  ;;  %v273_v53 = vld [vmem:[%s1116_s5 + $0x48] sm:$0xff]  ;;  %v274_v55 = vld [vmem:[%s1116_s5 + $0x50] sm:$0xff]  ;;  %v275_v56 = vld [vmem:[%s1116_s5 + $0x58] sm:$0xff] }
  0x10   :  { %v746_v54 = vpack.c.bf16 %v273_v53, %v272_v52  ;;  %v750_v57 = vpack.c.bf16 %v275_v56, %v274_v55  ;;  %v276_v58 = vld [vmem:[%s1116_s5 + $0x60] sm:$0xff]  ;;  %v277_v59 = vld [vmem:[%s1116_s5 + $0x68] sm:$0xff]  ;;  %v278_v61 = vld [vmem:[%s1116_s5 + $0x70] sm:$0xff] }
  0x11   :  { %v754_v60 = vpack.c.bf16 %v277_v59, %v276_v58  ;;  %v279_v62 = vld [vmem:[%s1116_s5 + $0x78] sm:$0xff]  ;;  %v541_v0 = vld [vmem:[%s1115_s4] ss:$0 sm:$0xff]  ;;  %s826_s4 = smov [#allocation2]  }
  0x12   :  { %v758_v63 = vpack.c.bf16 %v279_v62, %v278_v61  ;;  %v542_v7 = vld [vmem:[%s1117_s6] ss:$0 sm:$0xff]  ;;  %s501_s28 = sshll.u32 %s826_s4, 4  ;;  %s502_s28 = int_to_ptr.vmem [resolvable:$true] %s501_s28 }
  0x13   :  { %s775_s29 = scalar_lea.vmem %s502_s28, 128  ;;  %p780_p1 = scmp.lt.s32.totalorder %s502_s28, %s502_s28 }
  0x14   :  { %702 = vmatpush3.bf16.xpose.msk.msra.mxu0 %vm892_vm1, %v700_v14  ;;  %p776_p0 = scmp.ne.s32.totalorder %s502_s28, %s775_s29  ;;  %p781_p2 = scmp.lt.s32.totalorder %s775_s29, %s775_s29 }
  0x15   :  { %703 = vmatprep.subr.bf16.mxu0 %v823_v2 }
  0x16   :  { %p782_p3 = por %p781_p2, %p780_p1 }
  0x18   :  { %p783_p4 = pnand %p782_p3, %p776_p0 }
  0x1c   :  { %706 = vmatpush3.bf16.xpose.msk.msra.mxu0 %vm892_vm1, %v704_v17 }
  0x1d   :  { %707 = vmatprep.subr.bf16.mxu0 %v823_v2 }
  0x24   :  { %710 = vmatpush3.bf16.xpose.msk.msra.mxu0 %vm892_vm1, %v708_v20 }
  0x25   :  { %711 = vmatprep.subr.bf16.mxu0 %v823_v2 }
  0x2c   :  { %714 = vmatpush3.bf16.xpose.msk.msra.mxu0 %vm892_vm1, %v712_v23 }
  0x2d   :  { %715 = vmatprep.subr.bf16.mxu0 %v823_v2 }
  0x34   :  { %718 = vmatpush3.bf16.xpose.msk.msra.mxu0 %vm892_vm1, %v716_v26 }
  0x35   :  { %719 = vmatprep.subr.bf16.mxu0 %v823_v2 }
  0x3c   :  { %722 = vmatpush3.bf16.xpose.msk.msra.mxu0 %vm892_vm1, %v720_v29 }
  0x3d   :  { %761 = vmatprep.subr.bf16.mxu0 %v823_v2 }
  0x43   :  { %636 = vmatmul.mubr.msk.f32.vlgmr.msra.gmra.mrb[0].mxu0 %vm60_vm0, %v36_v30 }
  0x44   :  { %688 = vmatprep.mubr.msk.f32.mxu0 %vm824_vm2, %v825_v5 }
 0x116   :  { %v178_v35 = vpop.f32.mrb[0].mxu0 }
 0x117   :  { %v179_v36 = vadd.f32 %v523_v34, %v178_v35  ;;  %v637_v37 = vpop.f32.mrb[1].mxu0 }
 0x119   :  { %769 = vtanh.f32 %v179_v36 }
 0x123   :  { %v770_v42 = vpop.eup %769 }
 0x124   :  { %647 = vmatmul.mubr.f32.vlgmr.msra.gmra.mrb[0].mxu1 %v770_v42 }
 0x125   :  { %732 = vmatpush3.bf16.xpose.msk.msra.mxu1 %vm998_vm4, %v730_v40  ;;  %681 = vmatprep.mubr.msk.f32.mxu1 %vm824_vm2, %v825_v5  ;;  %v411_v5 = vld [vmem:[%s1118_s7 + $0x8] sm:$0xff] }
 0x126   :  { %733 = vmatprep.subr.bf16.mxu1 %v823_v2 }
 0x12d   :  { %736 = vmatpush3.bf16.xpose.msk.msra.mxu1 %vm998_vm4, %v734_v45 }
 0x12e   :  { %737 = vmatprep.subr.bf16.mxu1 %v823_v2 }
 0x135   :  { %740 = vmatpush3.bf16.xpose.msk.msra.mxu1 %vm998_vm4, %v738_v48 }
 0x136   :  { %741 = vmatprep.subr.bf16.mxu1 %v823_v2 }
 0x13d   :  { %744 = vmatpush3.bf16.xpose.msk.msra.mxu1 %vm998_vm4, %v742_v51 }
 0x13e   :  { %745 = vmatprep.subr.bf16.mxu1 %v823_v2 }
 0x145   :  { %748 = vmatpush3.bf16.xpose.msk.msra.mxu1 %vm998_vm4, %v746_v54 }
 0x146   :  { %749 = vmatprep.subr.bf16.mxu1 %v823_v2 }
 0x14d   :  { %752 = vmatpush3.bf16.xpose.msk.msra.mxu1 %vm998_vm4, %v750_v57 }
 0x14e   :  { %753 = vmatprep.subr.bf16.mxu1 %v823_v2 }
 0x155   :  { %756 = vmatpush3.bf16.xpose.msk.msra.mxu1 %vm998_vm4, %v754_v60 }
 0x156   :  { %757 = vmatprep.subr.bf16.mxu1 %v823_v2  ;;  %v410_v2 = vld [vmem:[%s1118_s7] sm:$0xff] }
 0x157   :  { %v762_v6 = vpack.c.bf16 %v411_v5, %v410_v2 }
 0x159   :  { %763 = vmatpush3.bf16.xpose.msra.mxu0 %v762_v6 }
 0x15d   :  { %760 = vmatpush3.bf16.xpose.msk.msra.mxu1 %vm998_vm4, %v758_v63 }
 0x1f7   :  { %v260_v1 = vpop.f32.mrb[0].mxu1 }
 0x1f8   :  { %v261_v3 = vadd.f32 %v541_v0, %v260_v1  ;;  %v648_v4 = vpop.f32.mrb[1].mxu1 }
 0x1fa   :  { %493 = vst.msk [vmem:[#allocation2] sm:$0xff] %vm287_vm3, %v261_v3  ;;  %682 = vmatmul.mubr.msk.f32.vlgmr.msra.gmra.mrb[2].mxu1 %vm287_vm3, %v261_v3 }
 0x2cd   :  { %v405_v8 = vpop.f32.mrb[2].mxu1 }
 0x2ce   :  { %v406_v9 = vadd.f32 %v542_v7, %v405_v8  ;;  %v683_v10 = vpop.f32.mrb[3].mxu1 }
 0x2d0   :  { %771 = vtanh.f32 %v406_v9 }
 0x2da   :  { %v772_v11 = vpop.eup %771 }
 0x2db   :  { %689 = vmatmul.mubr.f32.vlgmr.msra.gmra.mrb[2].mxu0 %v772_v11 }
 0x2dc   :  { %786 = shalt.err (!%p783_p4)
}
 0x2dd   :  { %s787_s6 = scalar_lea.hbm %s1120_s9, 128 }
 0x2de   :  { %p788_p5 = scmp.ne.s32.totalorder %s1120_s9, %s787_s6  ;;  %p791_p6 = scmp.lt.u32.totalorder %s787_s6, %s1120_s9 }
 0x2e0   :  { %p793_p7 = pnand %p791_p6, %p788_p5 }
 0x2e2   :  { %796 = shalt.err (!%p793_p7)
}
 0x2e3   :  { %504 = dma.vmem_to_hbm [thread:$0]  %s502_s28, 128, %s1120_s9, [#allocation3]   ;;  %v560_v12 = vld [vmem:[%s1119_s8] ss:$0 sm:$0xff] }
 0x2e4   :  { %s827_s17 = smov [#allocation4]  }
 0x2e5   :  { %s511_s18 = sshll.u32 %s827_s17, 4  ;;  %s512_s18 = int_to_ptr.vmem [resolvable:$true] %s511_s18 }
 0x2e6   :  { %s797_s2 = scalar_lea.vmem %s512_s18, 128  ;;  %p802_p9 = scmp.lt.s32.totalorder %s512_s18, %s512_s18 }
 0x2e7   :  { %p798_p8 = scmp.ne.s32.totalorder %s512_s18, %s797_s2  ;;  %p803_p10 = scmp.lt.s32.totalorder %s797_s2, %s797_s2 }
 0x2e9   :  { %p804_p11 = por %p803_p10, %p802_p9 }
 0x2eb   :  { %p805_p12 = pnand %p804_p11, %p798_p8 }
 0x3ae   :  { %v485_v13 = vpop.f32.mrb[2].mxu0 }
 0x3af   :  { %v486_v14 = vadd.f32 %v560_v12, %v485_v13  ;;  %v690_v15 = vpop.f32.mrb[3].mxu0 }
 0x3b1   :  { %v489_v16 = vmul.f32 0.5, %v486_v14 }
 0x3b3   :  { %773 = vtanh.f32 %v489_v16 }
 0x3bd   :  { %v774_v17 = vpop.eup %773 }
 0x3be   :  { %v491_v18 = vmul.f32 0.5, %v774_v17 }
 0x3c0   :  { %v492_v19 = vadd.f32 0.5, %v491_v18 }
 0x3c2   :  { %494 = vst.msk [vmem:[#allocation4] sm:$0xff] %vm60_vm0, %v492_v19 }
 0x3c3   :  { %808 = shalt.err (!%p805_p12)
}
 0x3c4   :  { %s809_s3 = scalar_lea.hbm %s1121_s10, 128 }
 0x3c5   :  { %p810_p13 = scmp.ne.s32.totalorder %s1121_s10, %s809_s3  ;;  %p813_p0 = scmp.lt.u32.totalorder %s809_s3, %s1121_s10 }
 0x3c7   :  { %p815_p1 = pnand %p813_p0, %p810_p13 }
 0x3c9   :  { %818 = shalt.err (!%p815_p1)
}
 0x3ca   :  { %514 = dma.vmem_to_hbm [thread:$0]  %s512_s18, 128, %s1121_s10, [#allocation5]  }
 0x3cb   :  { %819 = dma.done.wait [#allocation3], 128  }
 0x3cc   :  { %820 = vsyncadd [#allocation3], 4294967168 }
 0x3cd   :  { %821 = dma.done.wait [#allocation5], 128  }
 0x3ce   :  { %822 = vsyncadd [#allocation5], 4294967168 }
 0x3cf   :  { %521 = vsyncpa [#allocation3], 1 }
 0x3d0   :  { %522 = vsyncpa [#allocation5], 1 }

</bundles_post_ra>
